<compile_context>
chip_gen: v6e
topology: v6e:2x2x1
jax: 0.10.0
libtpu: 0.0.40
codegen_flags: <defaults>
</compile_context>

<pallas_src>
import jax
import jax.numpy as jnp
from jax.experimental import pallas as pl
from jax.experimental.pallas import tpu as pltpu


# ----------------------------------------------------------------------------
# Kernels
# ----------------------------------------------------------------------------
def _ff_kernel_scratch(x_ref, wt_ref, b_ref, o_ref, acc_ref):
    """y = relu(x @ w_t + b) with an f32 VMEM accumulator (non-f32 outputs)."""
    k = pl.program_id(2)

    @pl.when(k == 0)
    def _():
        acc_ref[...] = jnp.zeros_like(acc_ref)

    # MXU matmul, f32 accumulation.  x tile cast (if needed) under the MXU.
    acc_ref[...] += jnp.dot(x_ref[...].astype(wt_ref.dtype), wt_ref[...],
                            preferred_element_type=jnp.float32)

    @pl.when(k == pl.num_programs(2) - 1)
    def _():
        # Fused epilogue: bias + ReLU + cast, single lane-dense store.
        y = acc_ref[...] + b_ref[...].astype(jnp.float32)
        o_ref[...] = jnp.maximum(y, 0.0).astype(o_ref.dtype)


def _ff_kernel_inplace(x_ref, wt_ref, b_ref, o_ref):
    """f32 output path: accumulate directly into the resident output block.

    The output BlockSpec returns the same block index for every k, so the
    block stays in VMEM across the reduction; no separate scratch is needed
    (saves tm*tn*4 bytes — meaningful inside v7x's 64 MiB VMEM).
    """
    k = pl.program_id(2)

    @pl.when(k == 0)
    def _():
        o_ref[...] = jnp.zeros_like(o_ref)

    o_ref[...] += jnp.dot(x_ref[...].astype(wt_ref.dtype), wt_ref[...],
                          preferred_element_type=jnp.float32)

    @pl.when(k == pl.num_programs(2) - 1)
    def _():
        o_ref[...] = jnp.maximum(o_ref[...] + b_ref[...].astype(jnp.float32), 0.0)


# ----------------------------------------------------------------------------
# Helpers
# ----------------------------------------------------------------------------
def _round_up(x, m):
    return (x + m - 1) // m * m


def _aligned_divisor(dim, target, align=128):
    """Largest multiple of `align` that divides `dim` and is <= target.

    `dim` is guaranteed to be a multiple of `align` (params are zero-padded),
    so the worst case is `align` itself — never a silent full-dim fallback.
    """
    if dim <= target:
        return dim
    t = (min(target, dim) // align) * align
    while t >= align:
        if dim % t == 0:
            return t
        t -= align
    return align


def _vmem_estimate(tm, tn, tk, x_bytes, out_bytes, use_scratch):
    # Double-buffered x / W / bias / out tiles + optional resident f32 acc.
    return (2 * (tm * tk * x_bytes + tk * tn * 2 + tn * 4 + tm * tn * out_bytes)
            + (tm * tn * 4 if use_scratch else 0))


def _tpu_vmem_capacity_bytes():
    try:
        info = pltpu.get_tpu_info()
        cap = getattr(info, "vmem_capacity_bytes", None)
        if cap:
            return int(cap)
    except Exception:
        pass
    return 64 * 1024 * 1024  # conservative (v7x-sized) fallback


def prepare_ff_params(weight, bias, *, compute_dtype=jnp.bfloat16):
    """One-time param prep (do this OUTSIDE the hot/jitted call path).

    weight: (H_out, H_in) PyTorch nn.Linear layout;  bias: (H_out,).
    Returns (w_t, b): w_t in (H_in_pad, H_out_pad) layout, zero-padded to
    multiples of 128 and cast to the MXU compute dtype; b in f32, unpadded
    (its length records the true H_out so the wrapper can slice the output).
    """
    h_out, h_in = weight.shape
    w_t = weight.T.astype(compute_dtype)                       # (H_in, H_out)
    h_in_p, h_out_p = _round_up(h_in, 128), _round_up(h_out, 128)
    if (h_in_p, h_out_p) != (h_in, h_out):
        w_t = jnp.pad(w_t, ((0, h_in_p - h_in), (0, h_out_p - h_out)))
    return w_t, bias.astype(jnp.float32)


# ----------------------------------------------------------------------------
# Wrapper
# ----------------------------------------------------------------------------
def feed_forward(x, w_t, bias, *, tile_m=None, tile_n=None, tile_k=None):
    """Pallas equivalent of nn.ReLU()(nn.Linear(H, H)(x)).

    x:    (..., H_in)          activations (output keeps x.dtype)
    w_t:  (H_in_p, H_out_p)    padded/transposed weight from prepare_ff_params
    bias: (H_out,)             f32 bias (true, unpadded output width)
    """
    H_in_p, H_out_p = w_t.shape
    H_out = bias.shape[0]
    H_in = x.shape[-1]
    orig_lead = x.shape[:-1]
    out_dtype = x.dtype
    compute_dtype = w_t.dtype

    x2d = x.reshape(-1, H_in)
    if H_in != H_in_p:
        # Zero-pad K: numerically exact, the matching padded W rows are zero.
        x2d = jnp.pad(x2d, ((0, 0), (0, H_in_p - H_in)))
    M = x2d.shape[0]

    out_bytes = jnp.dtype(out_dtype).itemsize
    use_scratch = out_dtype != jnp.float32     # f32 outputs accumulate in place

    # --- generation-aware VMEM budget ---------------------------------------
    vmem_cap = _tpu_vmem_capacity_bytes()
    small_vmem = vmem_cap <= 96 * 1024 * 1024         # v7x-like (64 MiB / core)
    vmem_limit_cap = (54 if small_vmem else 100) * 1024 * 1024
    budget = vmem_limit_cap - 8 * 1024 * 1024         # compiler-scratch headroom

    # --- tile selection ------------------------------------------------------
    if tile_k is not None:
        tk = H_in_p if tile_k >= H_in_p else _aligned_divisor(H_in_p, max(128, tile_k))
    else:
        tk = _aligned_divisor(H_in_p, 512)

    if tile_n is not None:
        tn = H_out_p if tile_n >= H_out_p else _aligned_divisor(H_out_p, max(128, tile_n))
    else:
        # Prefer tn = H_out (no N tiling): x is then read from HBM exactly once.
        full_n_cap = 2048 if small_vmem else 4096
        tn = (H_out_p if H_out_p <= full_n_cap
              else _aligned_divisor(H_out_p, 1024 if small_vmem else 2048))

    if tile_m is not None:
        tm = M if tile_m >= M else max(8, (tile_m // 8) * 8)
    else:
        tm = min(1024, M)
        if tm < M:
            tm = max(8, (tm // 8) * 8)
        # Shrink until the double-buffered tiles fit the VMEM budget.
        while _vmem_estimate(tm, tn, tk, 2, out_bytes, use_scratch) > budget:
            if tm > 512:
                tm = max(512, ((tm // 2) // 8) * 8)
            elif tn > 1024:
                tn = _aligned_divisor(H_out_p, tn // 2)
            elif tm > 128:
                tm = max(128, ((tm // 2) // 8) * 8)
            elif tn > 128:
                tn = _aligned_divisor(H_out_p, max(128, tn // 2))
            elif tk > 128:
                tk = _aligned_divisor(H_in_p, max(128, tk // 2))
            else:
                break
        # v7x has 2 TensorCores: keep the parallel (i, j) grid non-degenerate
        # for problems with enough work, otherwise the second core idles.
        if (small_vmem and pl.cdiv(M, tm) * (H_out_p // tn) == 1
                and M * H_out_p >= (1 << 20)):
            if tn >= 256:
                tn = _aligned_divisor(H_out_p, tn // 2)
            elif tm >= 16:
                tm = max(8, ((tm // 2) // 8) * 8)

    grid = (pl.cdiv(M, tm), H_out_p // tn, H_in_p // tk)
    grid_m, grid_n, grid_k = grid

    # Skip the wrapper-side x->bf16 pass (an extra full HBM read+write of x)
    # when each x tile is read at most twice; the kernel casts under the MXU.
    wrapper_cast = (x2d.dtype != compute_dtype) and (
        grid_n > 2
        or _vmem_estimate(tm, tn, tk, jnp.dtype(x2d.dtype).itemsize,
                          out_bytes, use_scratch) > budget)
    if wrapper_cast:
        x2d = x2d.astype(compute_dtype)
    x_bytes = jnp.dtype(x2d.dtype).itemsize

    b2d = bias.astype(jnp.float32)
    if H_out != H_out_p:
        b2d = jnp.pad(b2d, (0, H_out_p - H_out))
    b2d = b2d.reshape(1, H_out_p)

    # Advisory cost estimate: count x / W replication across the N / M axes.
    cost = pl.CostEstimate(
        flops=2 * M * H_in_p * H_out_p,
        transcendentals=0,
        bytes_accessed=int(M * H_in_p * x_bytes * grid_n
                           + H_in_p * H_out_p * 2 * grid_m
                           + H_out_p * 4 * grid_m
                           + M * H_out_p * out_bytes),
    )

    vmem_est = _vmem_estimate(tm, tn, tk, x_bytes, out_bytes, use_scratch)
    vmem_limit = int(min(max(vmem_est + 8 * 1024 * 1024, 32 * 1024 * 1024),
                         vmem_limit_cap))

    kernel = _ff_kernel_scratch if use_scratch else _ff_kernel_inplace
    scratch = [pltpu.VMEM((tm, tn), jnp.float32)] if use_scratch else []

    out = pl.pallas_call(
        kernel,
        out_shape=jax.ShapeDtypeStruct((M, H_out_p), out_dtype),
        grid_spec=pltpu.PrefetchScalarGridSpec(
            num_scalar_prefetch=0,
            grid=grid,
            in_specs=[
                pl.BlockSpec((tm, tk), lambda i, j, k: (i, k)),   # x tile
                pl.BlockSpec((tk, tn), lambda i, j, k: (k, j)),   # weight tile
                pl.BlockSpec((1, tn), lambda i, j, k: (0, j)),    # bias slice
            ],
            out_specs=pl.BlockSpec((tm, tn), lambda i, j, k: (i, j)),
            scratch_shapes=scratch,
        ),
        compiler_params=pltpu.CompilerParams(
            dimension_semantics=("parallel", "parallel", "arbitrary"),
            vmem_limit_bytes=vmem_limit,
        ),
        cost_estimate=cost,
    )(x2d, w_t, b2d)

    if H_out != H_out_p:
        out = out[:, :H_out]
    return out.reshape(orig_lead + (H_out,))


# ----------------------------------------------------------------------------
# Self-test
# ----------------------------------------------------------------------------
def _torch_style_linear_init(kw, kb, hidden):
    # Deterministic synthetic params with PyTorch-Linear-like uniform bounds.
    bound = 1.0 / jnp.sqrt(hidden)
    weight = jax.random.uniform(kw, (hidden, hidden), jnp.float32, -bound, bound)
    bias = jax.random.uniform(kb, (hidden,), jnp.float32, -bound, bound)
    return weight, bias


def _ref_bf16(x, weight, bias):
    # bf16-matched reference (MXU runs bf16 inputs with f32 accumulation).
    h_in = weight.shape[1]
    y = jnp.dot(x.reshape(-1, h_in).astype(jnp.bfloat16),
                weight.T.astype(jnp.bfloat16),
                preferred_element_type=jnp.float32)
    y = jnp.maximum(y + bias.astype(jnp.float32), 0.0)
    return y.reshape(x.shape[:-1] + (weight.shape[0],))


if __name__ == "__main__":
    key = jax.random.PRNGKey(0)
    (k_x, k_w, k_b, k_x2, k_w2, k_b2, k_x3, k_w3, k_b3) = jax.random.split(key, 9)

    # --- Case 1: module-scale shapes (hidden=32 -> exercises 128-padding) ---
    batch, seq, hidden = 2, 8, 32
    x = jax.random.normal(k_x, (batch, seq, hidden), jnp.float32)
    weight, bias = _torch_style_linear_init(k_w, k_b, hidden)
    w_t, b = prepare_ff_params(weight, bias)        # one-time transpose+pad+bf16
    ff = jax.jit(feed_forward)
    y = ff(x, w_t, b)
    jax.block_until_ready(y)
    assert y.shape == x.shape
    y_ref = _ref_bf16(x, weight, bias)
    y_f32 = jnp.maximum(x @ weight.T + bias, 0.0)
    assert jnp.allclose(y, y_ref, atol=1e-4, rtol=1e-4)
    assert jnp.allclose(y, y_f32, atol=2e-2, rtol=2e-2)

    # --- Case 2: multi-block M/N/K grid + in-place f32 accumulation ---------
    hidden2 = 256
    x2 = jax.random.normal(k_x2, (3, 8, hidden2), jnp.float32)
    weight2, bias2 = _torch_style_linear_init(k_w2, k_b2, hidden2)
    w2_t, b2 = prepare_ff_params(weight2, bias2)
    y2 = feed_forward(x2, w2_t, b2, tile_m=8, tile_n=128, tile_k=128)
    jax.block_until_ready(y2)
    assert y2.shape == x2.shape
    assert jnp.allclose(y2, _ref_bf16(x2, weight2, bias2), atol=1e-4, rtol=1e-4)

    # --- Case 3: bf16 activations -> scratch-accumulator path, bf16 output --
    hidden3 = 128
    x3 = jax.random.normal(k_x3, (2, 8, hidden3), jnp.float32).astype(jnp.bfloat16)
    weight3, bias3 = _torch_style_linear_init(k_w3, k_b3, hidden3)
    w3_t, b3 = prepare_ff_params(weight3, bias3)
    y3 = feed_forward(x3, w3_t, b3)
    jax.block_until_ready(y3)
    assert y3.shape == x3.shape and y3.dtype == jnp.bfloat16
    y3_ref = _ref_bf16(x3.astype(jnp.float32), weight3, bias3).astype(jnp.bfloat16)
    assert jnp.allclose(y3.astype(jnp.float32), y3_ref.astype(jnp.float32),
                        atol=1e-2, rtol=1e-2)

    print("KERNEL_OK")
</pallas_src>

<mosaic_0001>
module attributes {stable_mosaic.version = 11 : i64} {
  func.func @_ff_kernel_inplace(%arg0: i32, %arg1: i32, %arg2: i32, %arg3: memref<16x128xf32, #tpu.memory_space<vmem>>, %arg4: memref<128x128xbf16, #tpu.memory_space<vmem>>, %arg5: memref<1x128xf32, #tpu.memory_space<vmem>>, %arg6: memref<16x128xf32, #tpu.memory_space<vmem>>) attributes {dimension_semantics = [#tpu.dimension_semantics<parallel>, #tpu.dimension_semantics<parallel>, #tpu.dimension_semantics<arbitrary>], iteration_bounds = array<i64: 1, 1, 1>, scalar_prefetch = 0 : i64, scratch_operands = 0 : i64, tpu.core_type = #tpu.core_type<tc>, window_params = [{transform_indices = @transform_0, window_bounds = array<i64: 16, 128>}, {transform_indices = @transform_1, window_bounds = array<i64: 128, 128>}, {transform_indices = @transform_2, window_bounds = array<i64: 1, 128>}, {transform_indices = @transform_3, window_bounds = array<i64: 16, 128>}]} {
    %c0_i32 = arith.constant 0 : i32
    %0 = arith.cmpi eq, %arg2, %c0_i32 : i32
    %1 = arith.extui %0 : i1 to i32
    %c0_i32_0 = arith.constant 0 : i32
    %2 = arith.cmpi ne, %1, %c0_i32_0 : i32
    scf.if %2 {
      %cst_10 = arith.constant 0.000000e+00 : f32
      %13 = vector.broadcast %cst_10 : f32 to vector<16x128xf32>
      %c0_11 = arith.constant 0 : index
      %c0_12 = arith.constant 0 : index
      %14 = vector.load %arg6[%c0_11, %c0_12] : memref<16x128xf32, #tpu.memory_space<vmem>>, vector<16x128xf32>
      tpu.vector_store %arg6[%c0_11, %c0_12], %13 {strides = array<i32>} : memref<16x128xf32, #tpu.memory_space<vmem>>, vector<16x128xf32>,
    } else {
    }
    %c0 = arith.constant 0 : index
    %c0_1 = arith.constant 0 : index
    %3 = vector.load %arg6[%c0, %c0_1] : memref<16x128xf32, #tpu.memory_space<vmem>>, vector<16x128xf32>
    %c0_2 = arith.constant 0 : index
    %c0_3 = arith.constant 0 : index
    %4 = vector.load %arg3[%c0_2, %c0_3] : memref<16x128xf32, #tpu.memory_space<vmem>>, vector<16x128xf32>
    %5 = arith.truncf %4 : vector<16x128xf32> to vector<16x128xbf16>
    %c0_4 = arith.constant 0 : index
    %c0_5 = arith.constant 0 : index
    %6 = vector.load %arg4[%c0_4, %c0_5] : memref<128x128xbf16, #tpu.memory_space<vmem>>, vector<128x128xbf16>
    %cst = arith.constant dense<0.000000e+00> : vector<16x128xf32>
    %7 = tpu.matmul %5, %6, %cst {dimension_numbers = #tpu.dot_dimension_numbers<[1], [0], [0], [1], [0, 0, 1, 1], [], []>} : vector<16x128xbf16>, vector<128x128xbf16>, vector<16x128xf32> -> vector<16x128xf32>
    %8 = arith.addf %3, %7 : vector<16x128xf32>
    %c0_6 = arith.constant 0 : index
    %c0_7 = arith.constant 0 : index
    %9 = vector.load %arg6[%c0_6, %c0_7] : memref<16x128xf32, #tpu.memory_space<vmem>>, vector<16x128xf32>
    tpu.vector_store %arg6[%c0_6, %c0_7], %8 {strides = array<i32>} : memref<16x128xf32, #tpu.memory_space<vmem>>, vector<16x128xf32>,
    %c0_i32_8 = arith.constant 0 : i32
    %10 = arith.cmpi eq, %arg2, %c0_i32_8 : i32
    %11 = arith.extui %10 : i1 to i32
    %c0_i32_9 = arith.constant 0 : i32
    %12 = arith.cmpi ne, %11, %c0_i32_9 : i32
    scf.if %12 {
      %c0_10 = arith.constant 0 : index
      %c0_11 = arith.constant 0 : index
      %13 = vector.load %arg6[%c0_10, %c0_11] : memref<16x128xf32, #tpu.memory_space<vmem>>, vector<16x128xf32>
      %c0_12 = arith.constant 0 : index
      %c0_13 = arith.constant 0 : index
      %14 = vector.load %arg5[%c0_12, %c0_13] : memref<1x128xf32, #tpu.memory_space<vmem>>, vector<1x128xf32>
      %15 = vector.broadcast %14 : vector<1x128xf32> to vector<16x128xf32>
      %16 = arith.addf %13, %15 : vector<16x128xf32>
      %cst_14 = arith.constant 0.000000e+00 : f32
      %17 = vector.broadcast %cst_14 : f32 to vector<16x128xf32>
      %18 = arith.maximumf %16, %17 : vector<16x128xf32>
      %c0_15 = arith.constant 0 : index
      %c0_16 = arith.constant 0 : index
      %19 = vector.load %arg6[%c0_15, %c0_16] : memref<16x128xf32, #tpu.memory_space<vmem>>, vector<16x128xf32>
      tpu.vector_store %arg6[%c0_15, %c0_16], %18 {strides = array<i32>} : memref<16x128xf32, #tpu.memory_space<vmem>>, vector<16x128xf32>,
    } else {
    }
    return
  }
  func.func @transform_0(%arg0: i32, %arg1: i32, %arg2: i32) -> (i32, i32) {
    %c0_i32 = arith.constant 0 : i32
    return %arg0, %arg2 : i32, i32
  }
  func.func @transform_1(%arg0: i32, %arg1: i32, %arg2: i32) -> (i32, i32) {
    %c0_i32 = arith.constant 0 : i32
    return %arg2, %arg1 : i32, i32
  }
  func.func @transform_2(%arg0: i32, %arg1: i32, %arg2: i32) -> (i32, i32) {
    %c0_i32 = arith.constant 0 : i32
    %c0_i32_0 = arith.constant 0 : i32
    return %c0_i32, %arg1 : i32, i32
  }
  func.func @transform_3(%arg0: i32, %arg1: i32, %arg2: i32) -> (i32, i32) {
    %c0_i32 = arith.constant 0 : i32
    return %arg0, %arg1 : i32, i32
  }
}

</mosaic_0001>

<bundles_post_ra>
// kernel: feed_forward.1
= control target key start
LH: loop header
LB: loop body
LE: loop exit
PB: predicated region body
PF: predicated region fallthrough
CT: control target
= control target key end

     0   :  { %8 = vsyncpa [#allocation3], 0  ;;  %s245_s12 = smov [#allocation2]   ;;  %s288_s0 = inlined_call_operand.vmem [shape: f32[16,128], index: 0, kind: input, shape index: {}]   ;;  %s289_s1 = inlined_call_operand.hbm [shape: bf16[128,128], index: 1, kind: input, shape index: {}]   ;;  %s290_s2 = inlined_call_operand.vmem [shape: f32[1,128], index: 2, kind: input, shape index: {}]   ;;  %s291_s3 = inlined_call_operand.vmem [shape: f32[16,128], index: 3, kind: output, shape index: {}]  }
   0x1   :  { %s16_s13 = sshll.u32 %s245_s12, 4  ;;  %s17_s13 = int_to_ptr.vmem [resolvable:$true] %s16_s13 }
   0x2   :  { %s231_s14 = scalar_lea.vmem %s17_s13, 1024  ;;  %p236_p1 = scmp.lt.s32.totalorder %s17_s13, %s17_s13 }
   0x3   :  { %p232_p0 = scmp.ne.s32.totalorder %s17_s13, %s231_s14  ;;  %p237_p2 = scmp.lt.s32.totalorder %s231_s14, %s231_s14 }
   0x5   :  { %p238_p3 = por %p237_p2, %p236_p1 }
   0x7   :  { %p239_p4 = pnand %p238_p3, %p232_p0 }
   0x9   :  { %242 = shalt.err (!%p239_p4)
}
   0xa   :  { %s246_s15 = smov 64   ;;  %s247_s16 = smov 4  }
   0xb   :  { %22 = dma.hbm_to_vmem [thread:$0]  %s289_s1, 1024, %s17_s13, [#allocation3], %s246_s15, %s246_s15, %s247_s16  }
   0xc   :  { %243 = dma.done.wait [#allocation3], 1024  }
   0xd   :  { %244 = vsyncadd [#allocation3], 4294966272  ;;  %v248_v0 = vmov 0.0   ;;  %vm249_vm0 = vmmov 0   ;;  %v215_v1 = vld [vmem:[#allocation2 + $0x38] sm:$0xff]   ;;  %v216_v2 = vld [vmem:[#allocation2 + $0x30] sm:$0xff]  }
   0xe   :  { %190 = vmatprep.subr.bf16.mxu0 %v248_v0  ;;  %206 = vmatprep.mubr.msk.bf16.mxu0 %vm249_vm0, %v248_v0  ;;  %v217_v3 = vld [vmem:[#allocation2 + $0x28] sm:$0xff]   ;;  %v218_v4 = vld [vmem:[#allocation2 + $0x20] sm:$0xff]   ;;  %v219_v5 = vld [vmem:[#allocation2 + $0x18] sm:$0xff]  }
   0xf   :  { %191 = vmatpush3.bf16.msra.mxu0 %v215_v1  ;;  %v220_v6 = vld [vmem:[#allocation2 + $0x10] sm:$0xff]   ;;  %v221_v7 = vld [vmem:[#allocation2 + $0x8] sm:$0xff]   ;;  %v222_v8 = vld [vmem:[#allocation2] sm:$0xff]  }
  0x10   :  { %192 = vmatprep.subr.bf16.mxu0 %v248_v0  ;;  %v37_v9 = vld [vmem:[%s288_s0] sm:$0xff]  ;;  %v38_v10 = vld [vmem:[%s288_s0 + $0x8] sm:$0xff] }
  0x11   :  { %v39_v11 = vpack.c.bf16 %v38_v10, %v37_v9  ;;  %v180_v13 = vld [vmem:[%s290_s2] ss:$0 sm:$0xff] }
  0x13   :  { %193 = vmatpush3.bf16.msra.mxu0 %v216_v2 }
  0x14   :  { %194 = vmatprep.subr.bf16.mxu0 %v248_v0 }
  0x17   :  { %195 = vmatpush3.bf16.msra.mxu0 %v217_v3 }
  0x18   :  { %196 = vmatprep.subr.bf16.mxu0 %v248_v0 }
  0x1b   :  { %197 = vmatpush3.bf16.msra.mxu0 %v218_v4 }
  0x1c   :  { %198 = vmatprep.subr.bf16.mxu0 %v248_v0 }
  0x1f   :  { %199 = vmatpush3.bf16.msra.mxu0 %v219_v5 }
  0x20   :  { %200 = vmatprep.subr.bf16.mxu0 %v248_v0 }
  0x23   :  { %201 = vmatpush3.bf16.msra.mxu0 %v220_v6 }
  0x24   :  { %202 = vmatprep.subr.bf16.mxu0 %v248_v0 }
  0x27   :  { %203 = vmatpush3.bf16.msra.mxu0 %v221_v7 }
  0x28   :  { %204 = vmatprep.subr.bf16.mxu0 %v248_v0 }
  0x2b   :  { %205 = vmatpush3.bf16.msra.mxu0 %v222_v8 }
  0x2e   :  { %207 = vmatmul.mubr.bf16.vlgmr.msra.gmra.mxu0 %v39_v11 }
  0xee   :  { %v138_v12 = vpop.f32.mrf.mxu0 }
  0xef   :  { %v161_v15 = vadd.f32 %v180_v13, %v138_v12 }
  0xf0   :  { %v208_v14 = vpop.f32.mrf.mxu0 }
  0xf1   :  { %v163_v17 = vmax.f32 %v161_v15, 0.0 }
  0xf2   :  { %v141_v16 = vpop.f32.mrf.mxu0 }
  0xf3   :  { %165 = vst [vmem:[%s291_s3] sm:$0xff] %v163_v17  ;;  %v162_v19 = vadd.f32 %v180_v13, %v141_v16 }
  0xf4   :  { %v209_v18 = vpop.f32.mrf.mxu0 }
  0xf5   :  { %v164_v20 = vmax.f32 %v162_v19, 0.0 }
  0xf7   :  { %166 = vst [vmem:[%s291_s3 + $0x8] sm:$0xff] %v164_v20 }
  0xf8   :  { %171 = vsyncpa [#allocation3], 1 }

</bundles_post_ra>
